<compile_context>
chip_gen: v7x
topology: tpu7x:2x2x1
jax: 0.10.0
libtpu: 0.0.40
codegen_flags: <defaults>
</compile_context>

<pallas_src>
import jax
import jax.numpy as jnp
from jax.experimental import pallas as pl
from jax.experimental.pallas import tpu as pltpu


# ----------------------------------------------------------------------------
# Pallas kernel: one (batch, lane-tile) block of the 1x1 conv
# ----------------------------------------------------------------------------
def _band_conv_out_kernel(w_ref, b_ref, x_ref, o_ref):
    """
    w_ref : (1, C)        VMEM  conv weight (resident across grid steps)
    b_ref : (1, 1)        SMEM  conv bias scalar (f32)
    x_ref : (C, TILE_L)   VMEM  activation tile (channels on sublanes)
    o_ref : (1, TILE_L)   VMEM  output tile
    """
    acc = jnp.dot(w_ref[...], x_ref[...], preferred_element_type=jnp.float32)
    o_ref[...] = (acc + b_ref[0, 0]).astype(o_ref.dtype)


# ----------------------------------------------------------------------------
# Wrapper: tiling directly over native (N, C, L), no re-layout / padding
# ----------------------------------------------------------------------------
def band_conv_out_pallas(x, w, b, *, max_tile_l=32768):
    """x: (N, C, L); w: (1, C, 1); b: (1,). Returns (N, 1, L) in x.dtype."""
    N, C, L = x.shape
    in_itemsize = jnp.dtype(x.dtype).itemsize

    # Lane-tile selection: as large as possible while the double-buffered
    # input tile stays under ~16 MiB of VMEM (safe on every generation).
    vmem_budget = 16 * 1024 * 1024
    max_lanes = max(128, (vmem_budget // (2 * C * in_itemsize)) // 128 * 128)
    tile_cap = min(max_tile_l, max_lanes)

    if L <= tile_cap:
        tile_l = L                     # full-extent block (128-rule exempt)
    else:
        tile_l = tile_cap              # multiple of 128; edge block is masked

    # Keep >=2 grid steps when N == 1 so v7x's two TensorCores both get work.
    if N == 1 and tile_l == L and L >= 256:
        tile_l = pl.cdiv(pl.cdiv(L, 2), 128) * 128

    grid = (N, pl.cdiv(L, tile_l))

    w2 = w.reshape(1, C).astype(x.dtype)          # (1, C) weight row
    b2 = b.reshape(1, 1).astype(jnp.float32)      # scalar bias in SMEM

    out_itemsize = in_itemsize
    cost = pl.CostEstimate(
        flops=2 * N * C * L,
        transcendentals=0,
        bytes_accessed=N * C * L * in_itemsize + C * in_itemsize
        + N * L * out_itemsize,
    )

    out = pl.pallas_call(
        _band_conv_out_kernel,
        out_shape=jax.ShapeDtypeStruct((N, 1, L), x.dtype),
        grid=grid,
        in_specs=[
            # weight: resident across all grid steps
            pl.BlockSpec((1, C), lambda n, l: (0, 0)),
            # bias: scalar in SMEM
            pl.BlockSpec(memory_space=pltpu.MemorySpace.SMEM),
            # activations: native (N, C, L); N squeezed -> kernel sees (C, TILE_L)
            pl.BlockSpec((None, C, tile_l), lambda n, l: (n, 0, l)),
        ],
        out_specs=pl.BlockSpec((None, 1, tile_l), lambda n, l: (n, 0, l)),
        compiler_params=pltpu.CompilerParams(
            dimension_semantics=("parallel", "parallel"),
            vmem_limit_bytes=32 * 1024 * 1024,
        ),
        cost_estimate=cost,
    )(w2, b2, x)

    return out                                    # (N, 1, L)


# ----------------------------------------------------------------------------
# Deterministic parameter init (PyTorch Conv1d default: U(-1/sqrt(fan_in), ..))
# ----------------------------------------------------------------------------
def init_band_conv_out(key, in_f):
    k1, k2 = jax.random.split(key)
    bound = 1.0 / (in_f ** 0.5)        # fan_in = in_f * kernel_size(=1)
    w = jax.random.uniform(k1, (1, in_f, 1), jnp.float32, -bound, bound)
    b = jax.random.uniform(k2, (1,), jnp.float32, -bound, bound)
    return w, b


# ----------------------------------------------------------------------------
# Pure-JAX reference (for correctness check)
# ----------------------------------------------------------------------------
def band_conv_out_ref(x, w, b):
    # 1x1 Conv1d: y[n, 0, l] = sum_c w[0, c, 0] * x[n, c, l] + b[0]
    return jnp.einsum("ncl,oc->nol", x, w[:, :, 0]) + b[None, :, None]


if __name__ == "__main__":
    key = jax.random.PRNGKey(0)
    kx, kp = jax.random.split(key)

    N, C, L = 2, 32, 16                # band net's last layer sees 32 channels
    x = jax.random.normal(kx, (N, C, L), jnp.float32)
    w, b = init_band_conv_out(kp, in_f=C)

    out = jax.jit(band_conv_out_pallas)(x, w, b)
    out = jax.block_until_ready(out)

    ref = band_conv_out_ref(x, w, b)
    assert out.shape == (N, 1, L), out.shape
    max_err = float(jnp.max(jnp.abs(out - ref)))
    if max_err > 1e-4:
        raise AssertionError(f"mismatch vs reference, max abs err = {max_err}")

    print("KERNEL_OK")
</pallas_src>

<mosaic_0001>
module attributes {stable_mosaic.version = 11 : i64} {
  func.func @_band_conv_out_kernel(%arg0: i32, %arg1: i32, %arg2: memref<1x32xf32, #tpu.memory_space<vmem>>, %arg3: memref<1x1xf32, #tpu.memory_space<smem>>, %arg4: memref<1x32x16xf32, #tpu.memory_space<vmem>>, %arg5: memref<1x1x16xf32, #tpu.memory_space<vmem>>) attributes {dimension_semantics = [#tpu.dimension_semantics<parallel>, #tpu.dimension_semantics<parallel>], iteration_bounds = array<i64: 2, 1>, scalar_prefetch = 0 : i64, scratch_operands = 0 : i64, tpu.core_type = #tpu.core_type<tc>, window_params = [{pipeline_mode = #tpu.pipeline_mode<synchronous>, transform_indices = @transform_0, window_bounds = array<i64: 1, 32>}, {transform_indices = @transform_1, window_bounds = array<i64: 1, 1>}, {transform_indices = @transform_2, window_bounds = array<i64: 1, 32, 16>}, {transform_indices = @transform_3, window_bounds = array<i64: 1, 1, 16>}]} {
    %c0 = arith.constant 0 : index
    %c0_0 = arith.constant 0 : index
    %0 = vector.load %arg2[%c0, %c0_0] : memref<1x32xf32, #tpu.memory_space<vmem>>, vector<1x32xf32>
    %c0_1 = arith.constant 0 : index
    %c0_2 = arith.constant 0 : index
    %c0_3 = arith.constant 0 : index
    %1 = vector.load %arg4[%c0_1, %c0_2, %c0_3] : memref<1x32x16xf32, #tpu.memory_space<vmem>>, vector<1x32x16xf32>
    %2 = vector.shape_cast %1 : vector<1x32x16xf32> to vector<32x16xf32>
    %cst = arith.constant dense<0.000000e+00> : vector<1x16xf32>
    %3 = tpu.matmul %0, %2, %cst {dimension_numbers = #tpu.dot_dimension_numbers<[1], [0], [0], [1], [0, 0, 1, 1], [], []>} : vector<1x32xf32>, vector<32x16xf32>, vector<1x16xf32> -> vector<1x16xf32>
    %c0_4 = arith.constant 0 : index
    %c0_5 = arith.constant 0 : index
    %4 = memref.load %arg3[%c0_4, %c0_5] : memref<1x1xf32, #tpu.memory_space<smem>>
    %5 = vector.broadcast %4 : f32 to vector<1x16xf32>
    %6 = arith.addf %3, %5 : vector<1x16xf32>
    %c0_6 = arith.constant 0 : index
    %c0_7 = arith.constant 0 : index
    %c0_8 = arith.constant 0 : index
    %7 = vector.load %arg5[%c0_6, %c0_7, %c0_8] : memref<1x1x16xf32, #tpu.memory_space<vmem>>, vector<1x1x16xf32>
    %8 = vector.shape_cast %7 : vector<1x1x16xf32> to vector<1x16xf32>
    %9 = vector.shape_cast %6 : vector<1x16xf32> to vector<1x1x16xf32>
    tpu.vector_store %arg5[%c0_6, %c0_7, %c0_8], %9 {strides = array<i32>} : memref<1x1x16xf32, #tpu.memory_space<vmem>>, vector<1x1x16xf32>,
    return
  }
  func.func @transform_0(%arg0: i32, %arg1: i32) -> (i32, i32) {
    %c0_i32 = arith.constant 0 : i32
    %c0_i32_0 = arith.constant 0 : i32
    %c0_i32_1 = arith.constant 0 : i32
    return %c0_i32, %c0_i32_0 : i32, i32
  }
  func.func @transform_1(%arg0: i32, %arg1: i32) -> (i32, i32) {
    %c0_i32 = arith.constant 0 : i32
    %c0_i32_0 = arith.constant 0 : i32
    %c0_i32_1 = arith.constant 0 : i32
    return %c0_i32, %c0_i32_0 : i32, i32
  }
  func.func @transform_2(%arg0: i32, %arg1: i32) -> (i32, i32, i32) {
    %c0_i32 = arith.constant 0 : i32
    %c0_i32_0 = arith.constant 0 : i32
    return %arg0, %c0_i32, %arg1 : i32, i32, i32
  }
  func.func @transform_3(%arg0: i32, %arg1: i32) -> (i32, i32, i32) {
    %c0_i32 = arith.constant 0 : i32
    %c0_i32_0 = arith.constant 0 : i32
    return %arg0, %c0_i32, %arg1 : i32, i32, i32
  }
}

</mosaic_0001>

<bundles_post_ra>
// kernel: band_conv_out_pallas.1
= control target key start
LH: loop header
LB: loop body
LE: loop exit
PB: predicated region body
PF: predicated region fallthrough
CT: control target
= control target key end

     0   :  { %s675_s0 = inlined_call_operand.vmem [shape: f32[1,32], index: 0, kind: input, shape index: {}]   ;;  %s676_s1 = inlined_call_operand.<no memory space> [shape: f32[1,1], index: 1, kind: input, shape index: {}]   ;;  %s677_s2 = inlined_call_operand.vmem [shape: f32[2,32,16], index: 2, kind: input, shape index: {}]   ;;  %s678_s3 = inlined_call_operand.hbm [shape: f32[2,1,16], index: 3, kind: output, shape index: {}]  }
   0x1   :  { %8 = sst [smem:[#allocation2]] %s676_s1 }
   0x2   :  { %9 = vsyncpa [#allocation4], 0 }
   0x3   :  { %11 = vsyncpa [#allocation4 + $0x1], 0  ;;  %s560_s14 = smov 0   ;;  %s562_s15 = smov 0  }
   0x4   :  { %s564_s16 = smov 0   ;;  %s566_s17 = smov 0  }
   0x5   :  { %s568_s18 = smov 0   ;;  %s570_s19 = smov 0  }
   0x6 LB: > { %s361_s1 = sadd.s32 4294967295, %s531_s19   ;;  %s362_s20 = sadd.s32 4294967294, %s531_s19   ;;  %s531_s19 = sphi %s570_s19, %s17_s19   ;;  %s527_s18 = sphi %s568_s18, %s685_s18   ;;  %s523_s17 = sphi %s566_s17, %s684_s17   ;;  %s519_s16 = sphi %s564_s16, %s683_s16   ;;  %s515_s15 = sphi %s562_s15, %s682_s15   ;;  %s511_s14 = sphi %s560_s14, %s681_s14  }
   0x7   : > { %s29_s21 = sadd.s32 1, %s527_s18  ;;  %s108_s22 = sadd.s32 1, %s519_s16 }
   0x8   : > { %p31_p0 = scmp.ge.s32.totalorder %s29_s21, 2  ;;  %p118_p1 = scmp.ne.s32.totalorder %s519_s16, %s515_s15 }
   0x9   : > { %p119_p2 = scmp.eq.s32.totalorder %s361_s1, 1  ;;  %p124_p3 = scmp.ne.s32.totalorder %s515_s15, %s511_s14 }
   0xa   : > { %s687_s21 = smov (%p31_p0, %s29_s21), 0  ;;  %p125_p5 = scmp.eq.s32.totalorder %s362_s20, 1 }
   0xb   : > { %p600_p4 = por %p119_p2, %p118_p1  ;;  %s103_s24 = ssub.s32 %s527_s18, %s687_s21 }
   0xc   : > { %p365_p6 = scmp.ge.s32.totalorder %s531_s19, 1  ;;  %p106_p7 = scmp.eq.s32.totalorder %s103_s24, 0 }
   0xd   : > { %p607_p8 = por %p125_p5, %p124_p3  ;;  %p160_p9 = scmp.lt.s32.totalorder %s531_s19, 3 }
   0xe   : > { %s613_s26 = scalar_select %p106_p7, %s519_s16, %s108_s22  }
   0xf   : > { %p161_p10 = pnand %p365_p6, %p160_p9 }
  0x10   : > { %p186_p11 = scmp.lt.s32.totalorder (!%p161_p10), %s523_s17, 1  ;;  %v533_v0 = vmov (!%p161_p10), 0.0|0.0   ;;  %vm534_vm0 = vmmov (!%p161_p10), 0   ;;  %v535_v1 = vmov (!%p161_p10), 0.0   ;;  %v194_v8 = vld [vmem:[%s675_s0] sm:$0x1] (!%p161_p10) }
  0x11   : > { %164 = sbr.rel (%p161_p10) target bundleno = 266 (0x10a), region = 32  ;;  %389 = vmatprep.subr.bf16.mxu0 (!%p161_p10), %v533_v0  ;;  %386 = vmatprep.mubr.msk.f32.mxu0 (!%p161_p10), %vm534_vm0, %v535_v1  ;;  %vm201_vm1 = vcmask (!%p161_p10), 261120   ;;  %s199_s7 = sld [smem:[#allocation2]] (!%p161_p10)  ;;  %vm275_vm2 = vcmask (!%p161_p10), 122880  }
  0x12   : > { %s184_s8 = sand.u32 (!%p161_p10), 1, %s515_s15   ;;  %s369_s9 = sshll.u32 (!%p161_p10), %s523_s17, 4 }
  0x13   : > { %s185_s10 = scalar_lea.vmem (!%p161_p10), [#allocation3], %s184_s8  ;;  %s628_s1 = scalar_lea.hbm (!%p161_p10), %s678_s3, %s369_s9 }
  0x14   : > { %s291_s11 = sshll.u32 (!%p161_p10), %s185_s10, 4  ;;  %s278_s20 = scalar_lea.sflag (!%p161_p10), [#allocation4], %s184_s8  ;;  %s630_s11 = int_to_ptr.vmem [resolvable:$true] %s291_s11 }
  0x15   : > { %s453_s22 = scalar_lea.vmem (!%p161_p10), %s630_s11, 16 }
  0x16   : > { %p454_p12 = scmp.ne.s32.totalorder (!%p161_p10), %s630_s11, %s453_s22 }
  0x17   : > { %v200_v9 = vstv (!%p161_p10), %s199_s7 }
  0x18   : > { %s187_s27 = scalar_select %p186_p11, %s523_s17, 1 }
  0x19   : > { %p455_p13 = pnand %p454_p12, %p600_p4  ;;  %s536_s17 = smov [#allocation3]  }
  0x1a   : > { %s372_s28 = sshll.u32 %s187_s27, 5  ;;  %s457_s24 = sshll.u32 %s536_s17, 4  ;;  %s458_s24 = int_to_ptr.vmem [resolvable:$false] %s457_s24 }
  0x1b   : > { %s193_s4 = scalar_lea.vmem %s677_s2, %s372_s28  ;;  %p456_p0 = pneg %p455_p13 }
  0x1c   : > { %v195_v2 = vld [vmem:[%s193_s4] sm:$0xff]  ;;  %v196_v3 = vld [vmem:[%s193_s4 + $0x8] sm:$0xff]  ;;  %v197_v4 = vld [vmem:[%s193_s4 + $0x10] sm:$0xff]  ;;  %s459_s27 = scalar_lea.vmem %s458_s24, 32  ;;  %p460_p1 = scmp.lt.s32.totalorder %s630_s11, %s458_s24 }
  0x1d   : > { %v390_v5 = vpack.c.bf16 %v196_v3, %v195_v2  ;;  %v198_v6 = vld [vmem:[%s193_s4 + $0x18] sm:$0xff]  ;;  %p461_p2 = scmp.lt.s32.totalorder %s459_s27, %s453_s22 }
  0x1e   : > { %v393_v7 = vpack.c.bf16 %v198_v6, %v197_v4 }
  0x1f   : > { %391 = vmatpush3.bf16.msra.mxu0 %v390_v5  ;;  %p462_p3 = por %p461_p2, %p460_p1 }
  0x20   : > { %392 = vmatprep.subr.bf16.mxu0 %v533_v0 }
  0x21   : > { %p463_p5 = pnand %p462_p3, %p456_p0 }
  0x23   : > { %394 = vmatpush3.bf16.msra.mxu0 %v393_v7 }
  0x26   : > { %387 = vmatmul.mubr.msk.f32.vlgmr.msra.gmra.mrb[0].mxu0 %vm201_vm1, %v194_v8 }
  0xf9   : > { %v271_v10 = vpop.f32.mrb[0].mxu0 }
  0xfa   : > { %v272_v11 = vadd.f32 %v271_v10, %v200_v9  ;;  %v388_v12 = vpop.f32.mrb[1].mxu0 }
  0xfc   : > { %276 = vst.msk [vmem:[%s185_s10] sm:$0x1] %vm275_vm2, %v272_v11 }
  0xfd   : > { %466 = shalt.err (!%p463_p5)
}
  0xfe   : > { %s467_s28 = scalar_lea.hbm %s628_s1, 16  ;;  %s471_s4 = scalar_lea.hbm %s678_s3, 32 }
  0xff   : > { %p468_p6 = scmp.ne.s32.totalorder %s628_s1, %s467_s28  ;;  %p472_p10 = scmp.lt.u32.totalorder %s628_s1, %s678_s3 }
 0x100   : > { %p473_p11 = scmp.lt.u32.totalorder %s471_s4, %s467_s28  ;;  %p475_p13 = scmp.lt.u32.totalorder %s467_s28, %s628_s1 }
 0x101   : > { %p469_p7 = pnand %p468_p6, %p600_p4 }
 0x102   : > { %p474_p12 = por %p473_p11, %p472_p10 }
 0x103   : > { %p470_p9 = pneg %p469_p7 }
 0x104   : > { %p476_p0 = por %p475_p13, %p474_p12 }
 0x106   : > { %p477_p1 = pnand %p476_p0, %p470_p9 }
 0x108   : > { %480 = shalt.err (!%p477_p1)
}
 0x109   : > { %395 = dma.vmem_to_hbm [thread:$0]  (%p600_p4), %s630_s11, 16, %s628_s1, %s278_s20  }
 0x10a PF: > { %p401_p2 = scmp.ge.s32.totalorder %s531_s19, 2  ;;  %s303_s7 = sand.u32 1, %s511_s14  }
 0x10b   : > { %s304_s8 = scalar_lea.sflag [#allocation4], %s303_s7 }
 0x10c   : > { %p398_p3 = pnand %p401_p2, %p607_p8 }
 0x10e   : > { %506 = dma.done.wait (!%p398_p3), %s304_s8, 16  }
 0x10f   : > { %508 = vsyncadd (!%p398_p3), %s304_s8, 4294967280  ;;  %s17_s19 = sadd.s32 1, %s531_s19   ;;  %s681_s14 = smov %s515_s15 }
 0x110   : > { %p14_p5 = scmp.ge.s32.totalorder %s17_s19, 4   ;;  %s682_s15 = smov %s519_s16 }
 0x111   : > { %s683_s16 = smov %s613_s26  ;;  %s684_s17 = smov %s527_s18 }
 0x112   : > { %s685_s18 = smov %s687_s21  ;;  %16 = sbr.rel (!%p14_p5) target bundleno = 6 (0x6), region = 67 }
 0x119   :  { %308 = vsyncpa [#allocation4], 1 }
 0x11a   :  { %310 = vsyncpa [#allocation4 + $0x1], 1 }

</bundles_post_ra>
